<compile_context>
chip_gen: v5e
topology: v5e:2x2
jax: 0.10.0
libtpu: 0.0.40
codegen_flags: <defaults>
</compile_context>

<pallas_src>
import functools

import jax
import jax.numpy as jnp
from jax.experimental import pallas as pl
from jax.experimental.pallas import tpu as pltpu

SELU_ALPHA = 1.6732632423543772
SELU_SCALE = 1.0507009873554804

HIDDEN = 16        # fc1 / fc2 width (fixed by the PyTorch module)
OUT_PAD = 8        # action dim (3) padded up to one f32 sublane tile

# Lane-aligned packed-parameter slab: every section starts on a 128-lane
# boundary so the in-kernel weight slices start at a vreg boundary.
SEC = 128
W1_COL, W2_COL, W3_COL = 0 * SEC, 1 * SEC, 2 * SEC
PACK_COLS = 3 * SEC            # (HIDDEN, 384) f32 = 24 KiB -> one resident DMA


def _round_up(x, m):
    return -(-x // m) * m


def _selu_core(v):
    # SELU without its output scale (the scale is folded into the NEXT layer's
    # packed weights).  exp(v)-1 instead of expm1 for guaranteed Mosaic/EUP
    # lowering; the ulp-level difference near 0 is far below the test tolerance.
    return jnp.where(v > 0.0, v, SELU_ALPHA * (jnp.exp(v) - 1.0))


def _forward_tile(xt, p):
    """x^T tile (S, TB) + packed params (H, 3*128) -> padded Q rows (OUT_PAD, TB)."""
    S = xt.shape[0]
    H = p.shape[0]

    # ---- fc1 + SELU: contraction depth = S (=2) -> VPU broadcast MACs --------
    z1 = p[:, W1_COL + S:W1_COL + S + 1] + p[:, W1_COL:W1_COL + 1] * xt[0:1, :]
    for k in range(1, S):                               # unrolled at trace time
        z1 = z1 + p[:, W1_COL + k:W1_COL + k + 1] * xt[k:k + 1, :]
    a1 = _selu_core(z1)                                 # (H, TB)

    # ---- fc2 + SELU: (H,H) @ (H,TB) on the MXU (lane-dense N) ----------------
    w2t = p[:, W2_COL:W2_COL + H]                       # SELU_SCALE * W2^T
    b2 = p[:, W2_COL + H:W2_COL + H + 1]                # (H, 1)
    z2 = jnp.dot(w2t, a1, preferred_element_type=jnp.float32) + b2
    a2 = _selu_core(z2)                                 # (H, TB)

    # ---- fc3: (OUT_PAD,H) @ (H,TB) on the MXU, lane-dense output -------------
    w3t = p[:OUT_PAD, W3_COL:W3_COL + H]                # SELU_SCALE * W3^T (row-padded)
    b3 = p[:OUT_PAD, W3_COL + H:W3_COL + H + 1]         # (OUT_PAD, 1)
    return jnp.dot(w3t, a2, preferred_element_type=jnp.float32) + b3


def qnet_kernel(xt_ref, p_ref, out_ref):
    """Training/eval path: full padded Q slab (OUT_PAD, TB)."""
    out_ref[...] = _forward_tile(xt_ref[...], p_ref[...]).astype(out_ref.dtype)


def qnet_greedy_kernel(xt_ref, p_ref, act_ref, *, action_num):
    """Acting path: fused argmax over the valid Q rows -> (1, TB) int32."""
    z3 = _forward_tile(xt_ref[...], p_ref[...])
    best_q = z3[0:1, :]
    best_i = jnp.zeros(best_q.shape, jnp.int32)
    for a in range(1, action_num):                      # unrolled, action_num is tiny
        qa = z3[a:a + 1, :]
        better = qa > best_q
        best_i = jnp.where(better, jnp.int32(a), best_i)
        best_q = jnp.where(better, qa, best_q)
    act_ref[...] = best_i


def pack_params(params, dtype=jnp.float32):
    """Pack w1,b1,w2,b2,w3,b3 into one lane-aligned (HIDDEN, 3*128) slab.

    Section layout (each section starts on a 128-lane boundary):
      cols [0   : S)        W1^T                  p[j, k]         = w1[k, j]
      col   S               b1
      cols [128 : 128+H)    SELU_SCALE * W2^T     p[j, 128+k]     = s*w2[k, j]
      col   128+H           b2
      cols [256 : 256+H)    SELU_SCALE * W3^T     (rows padded to OUT_PAD with 0)
      col   256+H           b3 (row-padded)
    Folding SELU's output scale into the following layer's weights is exactly
    equivalent to scaling the activations.  Pack ONCE per parameter update.
    """
    w1 = jnp.asarray(params["w1"], dtype)
    b1 = jnp.asarray(params["b1"], dtype).reshape(-1)
    w2 = jnp.asarray(params["w2"], dtype)
    b2 = jnp.asarray(params["b2"], dtype).reshape(-1)
    w3 = jnp.asarray(params["w3"], dtype)
    b3 = jnp.asarray(params["b3"], dtype).reshape(-1)
    S, H = w1.shape
    A = w3.shape[1]
    assert H == HIDDEN and w2.shape == (H, H) and w3.shape[0] == H
    assert A <= OUT_PAD, "heads with > 8 actions need a larger OUT_PAD"
    assert S + 1 <= SEC and H + 1 <= SEC

    p = jnp.zeros((H, PACK_COLS), dtype)
    p = p.at[:, W1_COL:W1_COL + S].set(w1.T)
    p = p.at[:, W1_COL + S].set(b1)
    p = p.at[:, W2_COL:W2_COL + H].set(SELU_SCALE * w2.T)
    p = p.at[:, W2_COL + H].set(b2)
    p = p.at[:A, W3_COL:W3_COL + H].set(SELU_SCALE * w3.T)
    p = p.at[:A, W3_COL + H].set(b3)
    return p


def _choose_tile(batch, max_tile=8192):
    """Pick (tile_lanes, padded_batch): 1 step for small batches, >=2 balanced
    tiles for large ones (dual-TC v7x), tiles capped well under VMEM limits."""
    b128 = max(128, _round_up(batch, 128))
    if b128 <= 1024:
        n_tiles = 1                       # single grid step: no per-step overhead
    else:
        n_tiles = max(2, -(-b128 // max_tile))
    tb = _round_up(-(-b128 // n_tiles), 128)
    b_pad = _round_up(b128, tb)
    return tb, b_pad


def _pad_transpose(x, b_pad):
    B, S = x.shape
    # batch lives on the 128-wide lane axis; pad with zeros (sliced away later)
    return jnp.zeros((S, b_pad), jnp.float32).at[:, :B].set(x.T.astype(jnp.float32))


def _launch(kernel, xt, packed, out_rows, out_dtype, tb, b_pad):
    S = xt.shape[0]
    return pl.pallas_call(
        kernel,
        out_shape=jax.ShapeDtypeStruct((out_rows, b_pad), out_dtype),
        grid=(b_pad // tb,),
        in_specs=[
            # batch tile of x^T (lane-dense)
            pl.BlockSpec((S, tb), lambda i: (0, i)),
            # packed parameters: constant block index -> fetched once, resident
            pl.BlockSpec((HIDDEN, PACK_COLS), lambda i: (0, 0)),
        ],
        out_specs=pl.BlockSpec((out_rows, tb), lambda i: (0, i)),
        compiler_params=pltpu.CompilerParams(
            dimension_semantics=("parallel",)),   # dual-TC chips split batch tiles
    )(xt, packed)


@functools.partial(jax.jit, static_argnames=("action_num", "max_tile"))
def qnet_forward(x, packed, *, action_num, max_tile=8192):
    """x: (batch, state_dim) f32, packed = pack_params(...) -> (batch, action_num) Q."""
    B, _ = x.shape
    tb, b_pad = _choose_tile(B, max_tile)
    xt = _pad_transpose(x, b_pad)
    out_t = _launch(qnet_kernel, xt, packed, OUT_PAD, jnp.float32, tb, b_pad)
    # drop padded action rows / padded batch columns; back to (B, A)
    return out_t[:action_num, :B].T


@functools.partial(jax.jit, static_argnames=("action_num", "max_tile"))
def qnet_greedy_action(x, packed, *, action_num, max_tile=8192):
    """Acting path: x (batch, state_dim) -> (batch,) int32 greedy actions."""
    B, _ = x.shape
    tb, b_pad = _choose_tile(B, max_tile)
    xt = _pad_transpose(x, b_pad)
    acts = _launch(functools.partial(qnet_greedy_kernel, action_num=action_num),
                   xt, packed, 1, jnp.int32, tb, b_pad)
    return acts[0, :B]


def init_qnet_params(key, state_dim, action_num):
    """Deterministic init mimicking torch.nn.Linear default U(-1/sqrt(fan_in), +)."""
    def linear(key, fan_in, fan_out):
        kw, kb = jax.random.split(key)
        bound = 1.0 / (fan_in ** 0.5)
        w = jax.random.uniform(kw, (fan_in, fan_out), jnp.float32, -bound, bound)
        b = jax.random.uniform(kb, (1, fan_out), jnp.float32, -bound, bound)
        return w, b

    k1, k2, k3 = jax.random.split(key, 3)
    w1, b1 = linear(k1, state_dim, HIDDEN)
    w2, b2 = linear(k2, HIDDEN, HIDDEN)
    w3, b3 = linear(k3, HIDDEN, action_num)
    return {"w1": w1, "b1": b1, "w2": w2, "b2": b2, "w3": w3, "b3": b3}


def _selu(v):
    return SELU_SCALE * jnp.where(v > 0, v, SELU_ALPHA * jnp.expm1(v))


def qnet_reference(x, p):
    # Full-precision f32 reference (explicit HIGHEST so the XLA-level dots do
    # not silently drop to bf16 on TPU and break the tolerance check).
    dot = lambda a, b: jnp.dot(a, b, precision=jax.lax.Precision.HIGHEST)
    h1 = _selu(dot(x, p["w1"]) + p["b1"])
    h2 = _selu(dot(h1, p["w2"]) + p["b2"])
    return dot(h2, p["w3"]) + p["b3"]


if __name__ == "__main__":
    # MountainCar-v0: state_dim = 2, action_num = 3.
    batch, state_dim, action_num = 8, 2, 3

    key = jax.random.PRNGKey(0)
    kx, kp = jax.random.split(key)
    x = jax.random.normal(kx, (batch, state_dim), jnp.float32)
    params = init_qnet_params(kp, state_dim, action_num)

    packed = pack_params(params)              # pack ONCE, outside the jitted forward

    # Q-value (training/eval) path — single grid step for this tiny batch.
    q = jax.block_until_ready(qnet_forward(x, packed, action_num=action_num))
    q_ref = qnet_reference(x, params)
    assert q.shape == (batch, action_num)
    assert jnp.allclose(q, q_ref, atol=1e-5, rtol=1e-5)

    # Greedy-action (acting) path — fused argmax, 4 B/sample writeback.
    acts = jax.block_until_ready(qnet_greedy_action(x, packed, action_num=action_num))
    assert acts.shape == (batch,)
    assert jnp.array_equal(acts, jnp.argmax(q, axis=1).astype(jnp.int32))

    # Larger batch exercises the multi-tile (>=2 balanced tiles) path.
    x2 = jax.random.normal(kx, (1500, state_dim), jnp.float32)
    q2 = jax.block_until_ready(qnet_forward(x2, packed, action_num=action_num))
    assert q2.shape == (1500, action_num)
    assert jnp.allclose(q2, qnet_reference(x2, params), atol=1e-5, rtol=1e-5)

    print("KERNEL_OK")
</pallas_src>

<mosaic_0001>
module attributes {stable_mosaic.version = 11 : i64} {
  func.func @qnet_kernel(%arg0: i32, %arg1: memref<2x128xf32, #tpu.memory_space<vmem>>, %arg2: memref<16x384xf32, #tpu.memory_space<vmem>>, %arg3: memref<8x128xf32, #tpu.memory_space<vmem>>) attributes {dimension_semantics = [#tpu.dimension_semantics<parallel>], iteration_bounds = array<i64: 1>, scalar_prefetch = 0 : i64, scratch_operands = 0 : i64, tpu.core_type = #tpu.core_type<tc>, window_params = [{transform_indices = @transform_0, window_bounds = array<i64: 2, 128>}, {pipeline_mode = #tpu.pipeline_mode<synchronous>, transform_indices = @transform_1, window_bounds = array<i64: 16, 384>}, {transform_indices = @transform_2, window_bounds = array<i64: 8, 128>}]} {
    %c0 = arith.constant 0 : index
    %c0_0 = arith.constant 0 : index
    %0 = vector.load %arg1[%c0, %c0_0] : memref<2x128xf32, #tpu.memory_space<vmem>>, vector<2x128xf32>
    %c0_1 = arith.constant 0 : index
    %c0_2 = arith.constant 0 : index
    %1 = vector.load %arg2[%c0_1, %c0_2] : memref<16x384xf32, #tpu.memory_space<vmem>>, vector<16x384xf32>
    %2 = vector.extract_strided_slice %1 {offsets = [0, 2], sizes = [16, 1], strides = [1, 1]} : vector<16x384xf32> to vector<16x1xf32>
    %3 = vector.extract_strided_slice %1 {offsets = [0, 0], sizes = [16, 1], strides = [1, 1]} : vector<16x384xf32> to vector<16x1xf32>
    %4 = vector.extract_strided_slice %0 {offsets = [0, 0], sizes = [1, 128], strides = [1, 1]} : vector<2x128xf32> to vector<1x128xf32>
    %5 = vector.broadcast %3 : vector<16x1xf32> to vector<16x128xf32>
    %6 = vector.broadcast %4 : vector<1x128xf32> to vector<16x128xf32>
    %7 = arith.mulf %5, %6 : vector<16x128xf32>
    %8 = vector.broadcast %2 : vector<16x1xf32> to vector<16x128xf32>
    %9 = arith.addf %8, %7 : vector<16x128xf32>
    %10 = vector.extract_strided_slice %1 {offsets = [0, 1], sizes = [16, 1], strides = [1, 1]} : vector<16x384xf32> to vector<16x1xf32>
    %11 = vector.extract_strided_slice %0 {offsets = [1, 0], sizes = [1, 128], strides = [1, 1]} : vector<2x128xf32> to vector<1x128xf32>
    %12 = vector.broadcast %10 : vector<16x1xf32> to vector<16x128xf32>
    %13 = vector.broadcast %11 : vector<1x128xf32> to vector<16x128xf32>
    %14 = arith.mulf %12, %13 : vector<16x128xf32>
    %15 = arith.addf %9, %14 : vector<16x128xf32>
    %cst = arith.constant 0.000000e+00 : f32
    %16 = vector.broadcast %cst : f32 to vector<16x128xf32>
    %17 = arith.cmpf ogt, %15, %16 : vector<16x128xf32>
    %18 = math.exp %15 : vector<16x128xf32>
    %cst_3 = arith.constant 1.000000e+00 : f32
    %19 = vector.broadcast %cst_3 : f32 to vector<16x128xf32>
    %20 = arith.subf %18, %19 : vector<16x128xf32>
    %cst_4 = arith.constant 1.67326319 : f32
    %21 = vector.broadcast %cst_4 : f32 to vector<16x128xf32>
    %22 = arith.mulf %21, %20 : vector<16x128xf32>
    %23 = arith.select %17, %15, %22 : vector<16x128xi1>, vector<16x128xf32>
    %24 = vector.extract_strided_slice %1 {offsets = [0, 128], sizes = [16, 16], strides = [1, 1]} : vector<16x384xf32> to vector<16x16xf32>
    %25 = vector.extract_strided_slice %1 {offsets = [0, 144], sizes = [16, 1], strides = [1, 1]} : vector<16x384xf32> to vector<16x1xf32>
    %cst_5 = arith.constant dense<0.000000e+00> : vector<16x128xf32>
    %26 = tpu.matmul %24, %23, %cst_5 {dimension_numbers = #tpu.dot_dimension_numbers<[1], [0], [0], [1], [0, 0, 1, 1], [], []>} : vector<16x16xf32>, vector<16x128xf32>, vector<16x128xf32> -> vector<16x128xf32>
    %27 = vector.broadcast %25 : vector<16x1xf32> to vector<16x128xf32>
    %28 = arith.addf %26, %27 : vector<16x128xf32>
    %cst_6 = arith.constant 0.000000e+00 : f32
    %29 = vector.broadcast %cst_6 : f32 to vector<16x128xf32>
    %30 = arith.cmpf ogt, %28, %29 : vector<16x128xf32>
    %31 = math.exp %28 : vector<16x128xf32>
    %cst_7 = arith.constant 1.000000e+00 : f32
    %32 = vector.broadcast %cst_7 : f32 to vector<16x128xf32>
    %33 = arith.subf %31, %32 : vector<16x128xf32>
    %cst_8 = arith.constant 1.67326319 : f32
    %34 = vector.broadcast %cst_8 : f32 to vector<16x128xf32>
    %35 = arith.mulf %34, %33 : vector<16x128xf32>
    %36 = arith.select %30, %28, %35 : vector<16x128xi1>, vector<16x128xf32>
    %37 = vector.extract_strided_slice %1 {offsets = [0, 256], sizes = [8, 16], strides = [1, 1]} : vector<16x384xf32> to vector<8x16xf32>
    %38 = vector.extract_strided_slice %1 {offsets = [0, 272], sizes = [8, 1], strides = [1, 1]} : vector<16x384xf32> to vector<8x1xf32>
    %cst_9 = arith.constant dense<0.000000e+00> : vector<8x128xf32>
    %39 = tpu.matmul %37, %36, %cst_9 {dimension_numbers = #tpu.dot_dimension_numbers<[1], [0], [0], [1], [0, 0, 1, 1], [], []>} : vector<8x16xf32>, vector<16x128xf32>, vector<8x128xf32> -> vector<8x128xf32>
    %40 = vector.broadcast %38 : vector<8x1xf32> to vector<8x128xf32>
    %41 = arith.addf %39, %40 : vector<8x128xf32>
    %c0_10 = arith.constant 0 : index
    %c0_11 = arith.constant 0 : index
    %42 = vector.load %arg3[%c0_10, %c0_11] : memref<8x128xf32, #tpu.memory_space<vmem>>, vector<8x128xf32>
    tpu.vector_store %arg3[%c0_10, %c0_11], %41 {strides = array<i32>} : memref<8x128xf32, #tpu.memory_space<vmem>>, vector<8x128xf32>,
    return
  }
  func.func @transform_0(%arg0: i32) -> (i32, i32) {
    %c0_i32 = arith.constant 0 : i32
    %c0_i32_0 = arith.constant 0 : i32
    return %c0_i32, %arg0 : i32, i32
  }
  func.func @transform_1(%arg0: i32) -> (i32, i32) {
    %c0_i32 = arith.constant 0 : i32
    %c0_i32_0 = arith.constant 0 : i32
    %c0_i32_1 = arith.constant 0 : i32
    return %c0_i32, %c0_i32_0 : i32, i32
  }
  func.func @transform_2(%arg0: i32) -> (i32, i32) {
    %c0_i32 = arith.constant 0 : i32
    %c0_i32_0 = arith.constant 0 : i32
    return %c0_i32, %arg0 : i32, i32
  }
}

</mosaic_0001>

<bundles_post_ra>
// kernel: qnet_forward.1
= control target key start
LH: loop header
LB: loop body
LE: loop exit
PB: predicated region body
PF: predicated region fallthrough
CT: control target
= control target key end

     0   :  { %7 = vsyncpa [#allocation3], 0  ;;  %s222_s12 = smov [#allocation2]   ;;  %s223_s14 = smov 384   ;;  %s256_s0 = inlined_call_operand.vmem [shape: f32[2,128], index: 0, kind: input, shape index: {}]   ;;  %s257_s1 = inlined_call_operand.hbm [shape: f32[16,384], index: 1, kind: input, shape index: {}]   ;;  %s258_s2 = inlined_call_operand.vmem [shape: f32[8,128], index: 2, kind: output, shape index: {}]  }
   0x1   :  { %s14_s11 = sshll.u32 %s257_s1, 4  ;;  %s16_s13 = sshll.u32 %s222_s12, 4  ;;  %s15_s11 = int_to_ptr.hbm [resolvable:$true] %s14_s11  ;;  %s17_s13 = int_to_ptr.vmem [resolvable:$true] %s16_s13 }
   0x2   :  { %s224_s15 = smov 24  }
   0x3   :  { %22 = dma.hbm_to_vmem [thread:$0]  %s15_s11, 768, %s17_s13, [#allocation3], %s223_s14, %s223_s14, %s224_s15  }
   0x4   :  { %220 = dma.done.wait [#allocation3], 768  }
   0x5   :  { %221 = vsyncadd [#allocation3], 4294966528  ;;  %v225_v0 = vmov 2   ;;  %v226_v1 = vmov 0   ;;  %v31_v2 = vld [vmem:[#allocation2 + $0x18] sm:$0xff]  ;;  %v28_v3 = vld [vmem:[#allocation2] sm:$0xff] }
   0x6   :  { %181 = vset.pattern.permute.xlu1 %v225_v0  ;;  %180 = vset.pattern.permute.xlu0 %v226_v1  ;;  %v227_v4 = vmov 1   ;;  %v27_v6 = vld [vmem:[%s256_s0] sm:$0x3]  ;;  %v29_v9 = vld [vmem:[#allocation2 + $0x8] sm:$0xff]  ;;  %v228_v11 = vmov 16   ;;  %vm91_vm2 = vcmask 130048  }
   0x7   :  { %183 = vset.pattern.permute.xlu2 %v225_v0  ;;  %51 = vperm.xlu1 %181, %v31_v2   ;;  %v32_v10 = vld [vmem:[#allocation2 + $0x20] sm:$0xff]  ;;  %v43_v12 = vperm.slane %v27_v6, 0  ;;  %v64_v13 = vperm.slane %v27_v6, 1  ;;  %v30_v35 = vld [vmem:[#allocation2 + $0x10] sm:$0xff] }
   0x8   :  { %40 = vperm.xlu0 %180, %v31_v2   ;;  %47 = vperm.xlu2 %183, %v28_v3  }
   0xf   :  { %182 = vset.pattern.permute.xlu1 %v227_v4 }
  0x10   :  { %35 = vperm.xlu0 %180, %v28_v3   ;;  %61 = vperm.xlu1 %182, %v31_v2  }
  0x11   :  { %184 = vset.pattern.permute.xlu2 %v227_v4 }
  0x12   :  { %57 = vperm.xlu2 %184, %v28_v3  }
  0x18   :  { %186 = vset.pattern.permute.xlu1 %v228_v11  ;;  %185 = vset.pattern.permute.xlu0 %v228_v11 }
  0x19   :  { %83 = vperm.xlu1 %186, %v29_v9   ;;  %88 = vperm.xlu0 %185, %v32_v10  }
  0x1a   :  { %187 = vset.pattern.permute.xlu2 %v228_v11 }
  0x1b   :  { %133 = vperm.xlu2 %187, %v30_v35  }
  0x62   :  { %v48_v5 = vpop.permute.xlu2 %47 }
  0x6c   :  { %v58_v15 = vpop.permute.xlu2 %57 }
  0x6d   :  { %v65_v19 = vmul.f32 %v64_v13, %v58_v15 }
  0x75   :  { %v134_v52 = vpop.permute.xlu2 %133 }
  0x79   :  { %v52_v7 = vpop.permute.xlu1 %51 }
  0x7a   :  { %v41_v8 = vpop.permute.xlu0 %40 }
  0x7b   :  { %v45_v14 = vmul.f32 %v43_v12, %v41_v8 }
  0x7d   :  { %v55_v20 = vadd.f32 %v52_v7, %v45_v14 }
  0x82   :  { %v36_v16 = vpop.permute.xlu0 %35  ;;  %v62_v18 = vpop.permute.xlu1 %61 }
  0x83   :  { %v44_v17 = vmul.f32 %v43_v12, %v36_v16  ;;  %v66_v21 = vmul.f32 %v64_v13, %v62_v18 }
  0x85   :  { %v54_v22 = vadd.f32 %v48_v5, %v44_v17  ;;  %v68_v23 = vadd.f32 %v66_v21, %v55_v20 }
  0x87   :  { %v67_v24 = vadd.f32 %v65_v19, %v54_v22  ;;  %v73_v25 = vmul.f32 1.442695, %v68_v23  ;;  %vm70_vm0 = vcmp.gt.f32.partialorder %v68_v23, 0.0 }
  0x89   :  { %v71_v26 = vmul.f32 1.442695, %v67_v24  ;;  %188 = vpow2.f32 %v73_v25  ;;  %vm69_vm1 = vcmp.gt.f32.partialorder %v67_v24, 0.0 }
  0x8b   :  { %190 = vpow2.f32 %v71_v26  ;;  %v84_v36 = vpop.permute.xlu1 %83  ;;  %v89_v40 = vpop.permute.xlu0 %88 }
  0x8f   :  { %v189_v27 = vpop.eup %188 }
  0x90   :  { %v165_v29 = vadd.f32 -1.0, %v189_v27 }
  0x91   :  { %v191_v28 = vpop.eup %190 }
  0x92   :  { %v164_v30 = vadd.f32 -1.0, %v191_v28  ;;  %v78_v31 = vmul.f32 1.6732632, %v165_v29 }
  0x94   :  { %v77_v32 = vmul.f32 1.6732632, %v164_v30  ;;  %v80_v33 = vsel %vm70_vm0, %v68_v23, %v78_v31 }
  0x95   :  { %110 = vmatpush.msra.mxu0 %v80_v33  ;;  %171 = vmatpush.msra.mxu2 %v80_v33 }
  0x96   :  { %v79_v34 = vsel %vm69_vm1, %v67_v24, %v77_v32 }
  0x97   :  { %111 = vmatpush.msra.mxu0 %v79_v34  ;;  %172 = vmatpush.msra.mxu2 %v79_v34 }
  0x98   :  { %166 = vmatmul.msk.f32.vlgmr.msra.gmra.mxu0 %vm91_vm2, %v29_v9  ;;  %167 = vmatmul.msk.f32.vlgmr.msra.gmra.mxu2 %vm91_vm2, %v32_v10 }
 0x115   :  { %v113_v37 = vpop.f32.mrf.mxu0 }
 0x116   :  { %v114_v38 = vadd.f32 %v113_v37, %v84_v36 }
 0x118   :  { %v121_v39 = vmul.f32 1.442695, %v114_v38  ;;  %vm119_vm4 = vcmp.gt.f32.partialorder %v114_v38, 0.0 }
 0x11a   :  { %192 = vpow2.f32 %v121_v39 }
 0x11b   :  { %v116_v41 = vpop.f32.mrf.mxu2 }
 0x11c   :  { %v117_v42 = vadd.f32 %v116_v41, %v89_v40 }
 0x11e   :  { %v123_v43 = vmul.f32 1.442695, %v117_v42  ;;  %vm120_vm3 = vcmp.gt.f32.partialorder %v117_v42, 0.0 }
 0x120   :  { %194 = vpow2.f32 %v123_v43  ;;  %v193_v44 = vpop.eup %192 }
 0x121   :  { %v168_v45 = vadd.f32 -1.0, %v193_v44 }
 0x123   :  { %v127_v49 = vmul.f32 1.6732632, %v168_v45 }
 0x125   :  { %v129_v51 = vsel %vm119_vm4, %v114_v38, %v127_v49 }
 0x126   :  { %v195_v46 = vpop.eup %194 }
 0x127   :  { %v169_v47 = vadd.f32 -1.0, %v195_v46 }
 0x129   :  { %v128_v48 = vmul.f32 1.6732632, %v169_v47 }
 0x12b   :  { %v130_v50 = vsel %vm120_vm3, %v117_v42, %v128_v48 }
 0x12c   :  { %152 = vmatpush.msra.mxu1 %v130_v50 }
 0x12e   :  { %153 = vmatpush.msra.mxu1 %v129_v51 }
 0x12f   :  { %170 = vmatmul.msk.f32.vlgmr.msra.gmra.mxu1 %vm91_vm2, %v30_v35 }
 0x1ac   :  { %v155_v53 = vpop.f32.mrf.mxu1 }
 0x1ad   :  { %v156_v54 = vadd.f32 %v155_v53, %v134_v52 }
 0x1af   :  { %158 = vst [vmem:[%s258_s2] sm:$0xff] %v156_v54 }
 0x1b0   :  { %163 = vsyncpa [#allocation3], 1 }

</bundles_post_ra>
